<compile_context>
chip_gen: v7x
topology: tpu7x:2x2x1
jax: 0.10.0
libtpu: 0.0.40
codegen_flags: <defaults>
</compile_context>

<pallas_src>
import jax
import jax.numpy as jnp
from jax.experimental import pallas as pl
from jax.experimental.pallas import tpu as pltpu

EPSILON = 1e-5
LANES = 128


def _cbn_kernel(x_ref, p_ref, perm_ref, out_ref):
    # x_ref/out_ref: (B, TS, 128) with real parts in even lanes, imag parts in odd lanes.
    # p_ref:         (3, TS, 128) = [g_self (rr/ii), g_cross (ri), beta], interleaved per lane.
    # perm_ref:      (128, 128) pair-swap permutation P with P[i, i^1] = 1.
    x = x_ref[...]
    perm = perm_ref[...]
    b, ts, ln = x.shape
    inv_b = 1.0 / b                                    # compile-time constant (no divide)

    def swap(v):
        # Lane l <-> lane l^1 via an exact permutation matmul on the (otherwise idle) MXU.
        return jnp.dot(v.reshape(b * ts, ln), perm,
                       preferred_element_type=jnp.float32,
                       precision=jax.lax.Precision.HIGHEST).reshape(b, ts, ln)

    # Batch statistics (per lane => per real/imag component of each feature).
    mu = jnp.sum(x, axis=0) * inv_b                    # (TS, 128): mu_r / mu_i
    xc = x - mu[None]                                  # centered: rc at even lanes, ic at odd
    xcp = swap(xc)                                     # partner:  ic at even lanes, rc at odd

    v_self = jnp.sum(xc * xc, axis=0) * inv_b + EPSILON          # Vrr / Vii per lane
    v_part = jnp.dot(v_self, perm, preferred_element_type=jnp.float32,
                     precision=jax.lax.Precision.HIGHEST)        # partner's variance
    vri = jnp.sum(xc * xcp, axis=0) * inv_b                      # Vri in every lane

    # Inverse square root of the per-feature 2x2 covariance (whitening), exact math.
    tau = v_self + v_part
    delta = v_self * v_part - vri * vri
    s = jnp.sqrt(delta)
    # 1/(s*t) with t = sqrt(tau + 2s):  (s*t)^2 = delta*(tau + 2s)  ->  one exact rsqrt.
    inv_st = jax.lax.rsqrt(delta * (tau + 2.0 * s))
    w_self = (v_part + s) * inv_st                     # Wrr at even lanes, Wii at odd lanes
    w_cross = -vri * inv_st                            # Wri everywhere

    n = w_self[None] * xc + w_cross[None] * xcp        # n_r at even lanes, n_i at odd lanes
    n_part = swap(n)                                   # n_i at even lanes, n_r at odd lanes

    g_self = p_ref[0]                                  # gamma_rr / gamma_ii per lane
    g_cross = p_ref[1]                                 # gamma_ri everywhere
    beta = p_ref[2]                                    # beta everywhere
    out_ref[...] = g_self[None] * n + g_cross[None] * n_part + beta[None]


def _choose_tile_rows(nr2, b):
    """Rows of 128 lanes per grid step: as large as the VMEM budget allows, multiple of 8."""
    # Estimated per-row VMEM planes: in/out double-buffered (4*b), stacked params
    # double-buffered (6), full-width temporaries xc/xcp/n/n_part (4*b).
    bytes_per_row = 4 * LANES * (4 * b + 6 + 4 * b)
    budget = 16 << 20            # keeps the total comfortably inside v7x's 64 MiB VMEM
    for ts in (2048, 1024, 512, 256, 128, 64, 32, 16, 8):
        if ts * bytes_per_row > budget:
            continue
        if ts <= nr2 and pl.cdiv(nr2, ts) >= 2:        # >=2 steps: pipelining / megacore
            return ts
    return min(nr2, 8)


@jax.jit
def complex_batch_normal(x, gamma_rr, gamma_ri, gamma_ii, beta):
    """Training-mode forward of ComplexBatchNormal.

    x: (B, C, H, W, 2) float32;  gamma_*, beta: (C, H, W) float32.
    returns: (B, C, H, W, 2) float32.
    """
    B, C, H, W, D = x.shape
    assert D == 2
    N = C * H * W
    # TODO(synk): shapes with (2*C*H*W) % 128 != 0 need wrapper-side zero padding of the
    # feature axis (safe: features are lane-independent); not implemented here.
    assert (2 * N) % LANES == 0, "2*C*H*W must be a multiple of 128"
    NR2 = (2 * N) // LANES
    TS = _choose_tile_rows(NR2, B)
    grid = (pl.cdiv(NR2, TS),)

    # Zero-copy view of the natural interleaved layout (real/imag in adjacent lanes).
    x_il = x.reshape(B, NR2, LANES)

    # Per-lane params in the same interleaved layout (N-sized, cheap), stacked into one array
    # so each grid step needs a single parameter DMA.
    def interleave(a, c):
        return jnp.stack([a.reshape(-1), c.reshape(-1)], axis=-1).reshape(NR2, LANES)

    params = jnp.stack([
        interleave(gamma_rr, gamma_ii),   # g_self : gamma_rr at even lanes, gamma_ii at odd
        interleave(gamma_ri, gamma_ri),   # g_cross: gamma_ri everywhere
        interleave(beta, beta),           # beta   : beta everywhere
    ], axis=0)                            # (3, NR2, 128)

    # 128x128 pair-swap permutation: P[i, i^1] = 1  =>  (v @ P)[..., l] = v[..., l^1].
    lane = jnp.arange(LANES, dtype=jnp.int32)
    perm = ((lane[:, None] ^ 1) == lane[None, :]).astype(x.dtype)

    data_spec = pl.BlockSpec((B, TS, LANES), lambda j: (0, j, 0))
    param_spec = pl.BlockSpec((3, TS, LANES), lambda j: (0, j, 0))
    perm_spec = pl.BlockSpec((LANES, LANES), lambda j: (0, 0))

    cost = pl.CostEstimate(
        flops=int((4 * LANES + 32) * B * 2 * N),   # two pair-swap matmuls + elementwise work
        transcendentals=int(4 * N),
        bytes_accessed=int((2 * B + 3) * 2 * N * 4 + LANES * LANES * 4),
    )

    out_il = pl.pallas_call(
        _cbn_kernel,
        out_shape=jax.ShapeDtypeStruct((B, NR2, LANES), x.dtype),
        grid_spec=pltpu.PrefetchScalarGridSpec(
            num_scalar_prefetch=0,
            grid=grid,
            in_specs=[data_spec, param_spec, perm_spec],
            out_specs=data_spec,
        ),
        compiler_params=pltpu.CompilerParams(
            dimension_semantics=("parallel",),
            vmem_limit_bytes=32 << 20,
        ),
        cost_estimate=cost,
    )(x_il, params, perm)

    # Zero-copy view back to the module's (B, C, H, W, 2) layout.
    return out_il.reshape(B, C, H, W, 2)


def _reference(x, gamma_rr, gamma_ri, gamma_ii, beta):
    # Pure-JAX reference mirroring the PyTorch forward (train=True, first call).
    real = x[..., 0]
    imag = x[..., 1]
    mu_r = jnp.mean(real, axis=0)
    mu_i = jnp.mean(imag, axis=0)
    rc = real - mu_r[None]
    ic = imag - mu_i[None]
    vrr = jnp.mean(rc * rc, 0) + EPSILON
    vii = jnp.mean(ic * ic, 0) + EPSILON
    vri = jnp.mean(rc * ic, 0)
    tau = vrr + vii
    delta = vrr * vii - vri ** 2
    s = jnp.sqrt(delta)
    t = jnp.sqrt(tau + 2 * s)
    inv = 1.0 / (s * t)
    wrr = ((vii + s) * inv)[None]
    wii = ((vrr + s) * inv)[None]
    wri = (-vri * inv)[None]
    n_r = wrr * rc + wri * ic
    n_i = wii * ic + wri * rc
    bn_r = gamma_rr[None] * n_r + gamma_ri[None] * n_i + beta[None]
    bn_i = gamma_ri[None] * n_r + gamma_ii[None] * n_i + beta[None]
    return jnp.stack((bn_r, bn_i), axis=-1)


if __name__ == "__main__":
    B, C, H, W = 2, 4, 16, 16
    key = jax.random.PRNGKey(0)
    kx, k1, k2, k3, k4 = jax.random.split(key, 5)

    x = jax.random.normal(kx, (B, C, H, W, 2), dtype=jnp.float32)
    gamma_rr = jax.random.normal(k1, (C, H, W), dtype=jnp.float32)
    gamma_ri = jax.random.normal(k2, (C, H, W), dtype=jnp.float32)
    gamma_ii = jax.random.normal(k3, (C, H, W), dtype=jnp.float32)
    beta = jax.random.normal(k4, (C, H, W), dtype=jnp.float32)

    out = complex_batch_normal(x, gamma_rr, gamma_ri, gamma_ii, beta)
    out = jax.block_until_ready(out)

    ref = _reference(x, gamma_rr, gamma_ri, gamma_ii, beta)
    assert out.shape == (B, C, H, W, 2)
    assert jnp.allclose(out, ref, atol=2e-3, rtol=2e-3), "mismatch vs reference"

    # TODO(synk): running_mean / running covariance EMA buffer updates are stateful module
    # bookkeeping outside this forward kernel (the stats could be emitted as extra outputs).
    print("KERNEL_OK")
</pallas_src>

<mosaic_0001>
module attributes {stable_mosaic.version = 11 : i64} {
  func.func @_cbn_kernel(%arg0: i32, %arg1: memref<2x8x128xf32, #tpu.memory_space<vmem>>, %arg2: memref<3x8x128xf32, #tpu.memory_space<vmem>>, %arg3: memref<128x128xf32, #tpu.memory_space<vmem>>, %arg4: memref<2x8x128xf32, #tpu.memory_space<vmem>>) attributes {dimension_semantics = [#tpu.dimension_semantics<parallel>], iteration_bounds = array<i64: 2>, scalar_prefetch = 0 : i64, scratch_operands = 0 : i64, tpu.core_type = #tpu.core_type<tc>, window_params = [{transform_indices = @transform_0, window_bounds = array<i64: 2, 8, 128>}, {transform_indices = @transform_1, window_bounds = array<i64: 3, 8, 128>}, {pipeline_mode = #tpu.pipeline_mode<synchronous>, transform_indices = @transform_2, window_bounds = array<i64: 128, 128>}, {transform_indices = @transform_3, window_bounds = array<i64: 2, 8, 128>}]} {
    %c0 = arith.constant 0 : index
    %c0_0 = arith.constant 0 : index
    %c0_1 = arith.constant 0 : index
    %0 = vector.load %arg1[%c0, %c0_0, %c0_1] : memref<2x8x128xf32, #tpu.memory_space<vmem>>, vector<2x8x128xf32>
    %c0_2 = arith.constant 0 : index
    %c0_3 = arith.constant 0 : index
    %1 = vector.load %arg3[%c0_2, %c0_3] : memref<128x128xf32, #tpu.memory_space<vmem>>, vector<128x128xf32>
    %cst = arith.constant dense<0.000000e+00> : vector<8x128xf32>
    %2 = vector.multi_reduction <add>, %0, %cst [0] : vector<2x8x128xf32> to vector<8x128xf32>
    %cst_4 = arith.constant 5.000000e-01 : f32
    %3 = vector.broadcast %cst_4 : f32 to vector<8x128xf32>
    %4 = arith.mulf %2, %3 : vector<8x128xf32>
    %5 = vector.shape_cast %4 : vector<8x128xf32> to vector<1x8x128xf32>
    %6 = vector.broadcast %5 : vector<1x8x128xf32> to vector<2x8x128xf32>
    %7 = arith.subf %0, %6 : vector<2x8x128xf32>
    %8 = vector.shape_cast %7 : vector<2x8x128xf32> to vector<16x128xf32>
    %cst_5 = arith.constant dense<0.000000e+00> : vector<16x128xf32>
    %9 = tpu.matmul %8, %1, %cst_5 {dimension_numbers = #tpu.dot_dimension_numbers<[1], [0], [0], [1], [0, 0, 1, 1], [], []>, precision = #tpu.contract_precision<fp32>} : vector<16x128xf32>, vector<128x128xf32>, vector<16x128xf32> -> vector<16x128xf32>
    %10 = vector.shape_cast %9 : vector<16x128xf32> to vector<2x8x128xf32>
    %11 = arith.mulf %7, %7 : vector<2x8x128xf32>
    %cst_6 = arith.constant dense<0.000000e+00> : vector<8x128xf32>
    %12 = vector.multi_reduction <add>, %11, %cst_6 [0] : vector<2x8x128xf32> to vector<8x128xf32>
    %cst_7 = arith.constant 5.000000e-01 : f32
    %13 = vector.broadcast %cst_7 : f32 to vector<8x128xf32>
    %14 = arith.mulf %12, %13 : vector<8x128xf32>
    %cst_8 = arith.constant 9.99999974E-6 : f32
    %15 = vector.broadcast %cst_8 : f32 to vector<8x128xf32>
    %16 = arith.addf %14, %15 : vector<8x128xf32>
    %cst_9 = arith.constant dense<0.000000e+00> : vector<8x128xf32>
    %17 = tpu.matmul %16, %1, %cst_9 {dimension_numbers = #tpu.dot_dimension_numbers<[1], [0], [0], [1], [0, 0, 1, 1], [], []>, precision = #tpu.contract_precision<fp32>} : vector<8x128xf32>, vector<128x128xf32>, vector<8x128xf32> -> vector<8x128xf32>
    %18 = arith.mulf %7, %10 : vector<2x8x128xf32>
    %cst_10 = arith.constant dense<0.000000e+00> : vector<8x128xf32>
    %19 = vector.multi_reduction <add>, %18, %cst_10 [0] : vector<2x8x128xf32> to vector<8x128xf32>
    %cst_11 = arith.constant 5.000000e-01 : f32
    %20 = vector.broadcast %cst_11 : f32 to vector<8x128xf32>
    %21 = arith.mulf %19, %20 : vector<8x128xf32>
    %22 = arith.addf %16, %17 : vector<8x128xf32>
    %23 = arith.mulf %16, %17 : vector<8x128xf32>
    %24 = arith.mulf %21, %21 : vector<8x128xf32>
    %25 = arith.subf %23, %24 : vector<8x128xf32>
    %26 = math.sqrt %25 : vector<8x128xf32>
    %cst_12 = arith.constant 2.000000e+00 : f32
    %27 = vector.broadcast %cst_12 : f32 to vector<8x128xf32>
    %28 = arith.mulf %27, %26 : vector<8x128xf32>
    %29 = arith.addf %22, %28 : vector<8x128xf32>
    %30 = arith.mulf %25, %29 : vector<8x128xf32>
    %31 = math.rsqrt %30 : vector<8x128xf32>
    %32 = arith.addf %17, %26 : vector<8x128xf32>
    %33 = arith.mulf %32, %31 : vector<8x128xf32>
    %cst_13 = arith.constant 0.000000e+00 : f32
    %34 = vector.broadcast %cst_13 : f32 to vector<8x128xf32>
    %35 = arith.subf %34, %21 : vector<8x128xf32>
    %36 = arith.mulf %35, %31 : vector<8x128xf32>
    %37 = vector.shape_cast %33 : vector<8x128xf32> to vector<1x8x128xf32>
    %38 = vector.broadcast %37 : vector<1x8x128xf32> to vector<2x8x128xf32>
    %39 = arith.mulf %38, %7 : vector<2x8x128xf32>
    %40 = vector.shape_cast %36 : vector<8x128xf32> to vector<1x8x128xf32>
    %41 = vector.broadcast %40 : vector<1x8x128xf32> to vector<2x8x128xf32>
    %42 = arith.mulf %41, %10 : vector<2x8x128xf32>
    %43 = arith.addf %39, %42 : vector<2x8x128xf32>
    %44 = vector.shape_cast %43 : vector<2x8x128xf32> to vector<16x128xf32>
    %cst_14 = arith.constant dense<0.000000e+00> : vector<16x128xf32>
    %45 = tpu.matmul %44, %1, %cst_14 {dimension_numbers = #tpu.dot_dimension_numbers<[1], [0], [0], [1], [0, 0, 1, 1], [], []>, precision = #tpu.contract_precision<fp32>} : vector<16x128xf32>, vector<128x128xf32>, vector<16x128xf32> -> vector<16x128xf32>
    %46 = vector.shape_cast %45 : vector<16x128xf32> to vector<2x8x128xf32>
    %c0_15 = arith.constant 0 : index
    %c0_16 = arith.constant 0 : index
    %c0_17 = arith.constant 0 : index
    %47 = vector.load %arg2[%c0_15, %c0_16, %c0_17] : memref<3x8x128xf32, #tpu.memory_space<vmem>>, vector<1x8x128xf32>
    %48 = vector.shape_cast %47 : vector<1x8x128xf32> to vector<8x128xf32>
    %c1 = arith.constant 1 : index
    %c0_18 = arith.constant 0 : index
    %c0_19 = arith.constant 0 : index
    %49 = vector.load %arg2[%c1, %c0_18, %c0_19] : memref<3x8x128xf32, #tpu.memory_space<vmem>>, vector<1x8x128xf32>
    %50 = vector.shape_cast %49 : vector<1x8x128xf32> to vector<8x128xf32>
    %c2 = arith.constant 2 : index
    %c0_20 = arith.constant 0 : index
    %c0_21 = arith.constant 0 : index
    %51 = vector.load %arg2[%c2, %c0_20, %c0_21] : memref<3x8x128xf32, #tpu.memory_space<vmem>>, vector<1x8x128xf32>
    %52 = vector.shape_cast %51 : vector<1x8x128xf32> to vector<8x128xf32>
    %53 = vector.shape_cast %48 : vector<8x128xf32> to vector<1x8x128xf32>
    %54 = vector.broadcast %53 : vector<1x8x128xf32> to vector<2x8x128xf32>
    %55 = arith.mulf %54, %43 : vector<2x8x128xf32>
    %56 = vector.shape_cast %50 : vector<8x128xf32> to vector<1x8x128xf32>
    %57 = vector.broadcast %56 : vector<1x8x128xf32> to vector<2x8x128xf32>
    %58 = arith.mulf %57, %46 : vector<2x8x128xf32>
    %59 = arith.addf %55, %58 : vector<2x8x128xf32>
    %60 = vector.shape_cast %52 : vector<8x128xf32> to vector<1x8x128xf32>
    %61 = vector.broadcast %60 : vector<1x8x128xf32> to vector<2x8x128xf32>
    %62 = arith.addf %59, %61 : vector<2x8x128xf32>
    %c0_22 = arith.constant 0 : index
    %c0_23 = arith.constant 0 : index
    %c0_24 = arith.constant 0 : index
    %63 = vector.load %arg4[%c0_22, %c0_23, %c0_24] : memref<2x8x128xf32, #tpu.memory_space<vmem>>, vector<2x8x128xf32>
    tpu.vector_store %arg4[%c0_22, %c0_23, %c0_24], %62 {strides = array<i32>} : memref<2x8x128xf32, #tpu.memory_space<vmem>>, vector<2x8x128xf32>,
    return
  }
  func.func @transform_0(%arg0: i32) -> (i32, i32, i32) {
    %c0_i32 = arith.constant 0 : i32
    %c0_i32_0 = arith.constant 0 : i32
    %c0_i32_1 = arith.constant 0 : i32
    return %c0_i32, %arg0, %c0_i32_0 : i32, i32, i32
  }
  func.func @transform_1(%arg0: i32) -> (i32, i32, i32) {
    %c0_i32 = arith.constant 0 : i32
    %c0_i32_0 = arith.constant 0 : i32
    %c0_i32_1 = arith.constant 0 : i32
    return %c0_i32, %arg0, %c0_i32_0 : i32, i32, i32
  }
  func.func @transform_2(%arg0: i32) -> (i32, i32) {
    %c0_i32 = arith.constant 0 : i32
    %c0_i32_0 = arith.constant 0 : i32
    %c0_i32_1 = arith.constant 0 : i32
    return %c0_i32, %c0_i32_0 : i32, i32
  }
  func.func @transform_3(%arg0: i32) -> (i32, i32, i32) {
    %c0_i32 = arith.constant 0 : i32
    %c0_i32_0 = arith.constant 0 : i32
    %c0_i32_1 = arith.constant 0 : i32
    return %c0_i32, %arg0, %c0_i32_0 : i32, i32, i32
  }
}

</mosaic_0001>

<bundles_post_ra>
// kernel: complex_batch_normal.1
= control target key start
LH: loop header
LB: loop body
LE: loop exit
PB: predicated region body
PF: predicated region fallthrough
CT: control target
= control target key end

     0   :  { %s4066_s12 = smov 0   ;;  %s4068_s13 = smov 0   ;;  %s4828_s0 = inlined_call_operand.vmem [shape: f32[2,16,128], index: 0, kind: input, shape index: {}]   ;;  %s4829_s1 = inlined_call_operand.vmem [shape: f32[3,16,128], index: 1, kind: input, shape index: {}]   ;;  %s4830_s2 = inlined_call_operand.vmem [shape: f32[128,128], index: 2, kind: input, shape index: {}]   ;;  %s4831_s3 = inlined_call_operand.vmem [shape: f32[2,16,128], index: 3, kind: output, shape index: {}]  }
   0x1   :  { %s4070_s14 = smov 0  }
   0x2 LB: > { %s2464_s15 = sadd.s32 4294967295, %s4041_s14   ;;  %s4083_s16 = sadd.s32 1, %s4041_s14   ;;  %s4041_s14 = sphi %s4070_s14, %s4836_s14   ;;  %s4037_s13 = sphi %s4068_s13, %s4835_s13   ;;  %s4033_s12 = sphi %s4066_s12, %s4834_s12  }
   0x3   : > { %s17_s17 = ssub.s32 %s4041_s14, %s4083_s16  ;;  %s20_s18 = sadd.s32 1, %s4037_s13 }
   0x4   : > { %p18_p0 = scmp.eq.s32.totalorder %s17_s17, 0  ;;  %p27_p1 = scmp.ne.s32.totalorder %s4037_s13, %s4033_s12 }
   0x5   : > { %p28_p2 = scmp.eq.s32.totalorder %s4041_s14, 0  ;;  %p104_p3 = scmp.eq.s32.totalorder %s2464_s15, 1 }
   0x6   : > { %s4094_s19 = scalar_select %p18_p0, %s4037_s13, %s20_s18  }
   0x7   : > { %p4096_p4 = por %p28_p2, %p27_p1  ;;  %p4100_p5 = por %p104_p3, %p27_p1 }
   0x8   : > { %p2467_p6 = scmp.ge.s32.totalorder %s4041_s14, 2 }
   0xa   : > { %129 = sbr.rel (%p2467_p6) target bundleno = 31 (0x1f), region = 20 }
  0x11   : > { %132 = sbr.rel (!%p4096_p4) target bundleno = 24 (0x18), region = 24  ;;  %s134_s22 = sand.u32 (%p4096_p4), 1, %s4037_s13  }
  0x12   : > { %s2469_s23 = sshll.u32 (%p4096_p4), %s4041_s14, 3  ;;  %s2468_s24 = sshll.u32 (%p4096_p4), %s134_s22, 4 }
  0x13   : > { %s138_s27 = scalar_lea.vmem (%p4096_p4), %s4828_s0, %s2469_s23  ;;  %s136_s28 = scalar_lea.vmem (%p4096_p4), [#allocation2], %s2468_s24 }
  0x14   : > { %v168_v0 = vld [vmem:[%s138_s27] sm:$0xff] (%p4096_p4)  ;;  %v170_v1 = vld [vmem:[%s138_s27 + $0x10] sm:$0xff] (%p4096_p4) }
  0x15   : > { %169 = vst [vmem:[%s136_s28] sm:$0xff] (%p4096_p4), %v168_v0  ;;  %171 = vst [vmem:[%s136_s28 + $0x8] sm:$0xff] (%p4096_p4), %v170_v1 }
  0x18 PF: > { %177 = sbr.rel (!%p4096_p4) target bundleno = 31 (0x1f), region = 62  ;;  %s179_s29 = sand.u32 (%p4096_p4), 1, %s4037_s13  }
  0x19   : > { %s2470_s30 = sshll.u32 (%p4096_p4), %s4041_s14, 3  ;;  %s3986_s4 = smul.u32 (%p4096_p4), 24, %s179_s29 }
  0x1a   : > { %s183_s7 = scalar_lea.vmem (%p4096_p4), %s4829_s1, %s2470_s30 }
  0x1b   : > { %v215_v2 = vld [vmem:[%s183_s7] sm:$0xff] (%p4096_p4)  ;;  %v217_v3 = vld [vmem:[%s183_s7 + $0x10] sm:$0xff] (%p4096_p4)  ;;  %s181_s8 = scalar_lea.vmem (%p4096_p4), [#allocation3], %s3986_s4 }
  0x1c   : > { %v219_v4 = vld [vmem:[%s183_s7 + $0x20] sm:$0xff] (%p4096_p4)  ;;  %216 = vst [vmem:[%s181_s8] sm:$0xff] (%p4096_p4), %v215_v2  ;;  %218 = vst [vmem:[%s181_s8 + $0x8] sm:$0xff] (%p4096_p4), %v217_v3 }
  0x1d   : > { %220 = vst [vmem:[%s181_s8 + $0x10] sm:$0xff] (%p4096_p4), %v219_v4 }
  0x1f PF: > { %p2471_p7 = scmp.ge.s32.totalorder %s4041_s14, 1  ;;  %p225_p8 = scmp.lt.s32.totalorder %s4041_s14, 3 }
  0x21   : > { %p226_p9 = pnand %p2471_p7, %p225_p8 }
  0x22   : > { %v267_v5 = vld [vmem:[%s4830_s2] sm:$0xff] (!%p226_p9)  ;;  %v268_v6 = vld [vmem:[%s4830_s2 + $0x8] sm:$0xff] (!%p226_p9)  ;;  %v4130_v7 = vld [vmem:[%s4830_s2 + $0x10] sm:$0xff] (!%p226_p9)  ;;  %s232_s22 = sand.u32 (!%p226_p9), 1, %s4033_s12   ;;  %vm4044_vm0 = vmmov (!%p226_p9), 0  }
  0x23   : > { %229 = sbr.rel (%p226_p9) target bundleno = 980 (0x3d4), region = 100  ;;  %v288_v8 = vand.u32 (!%p226_p9), 4294901760, %v267_v5  ;;  %v291_v9 = vand.u32 (!%p226_p9), 4294901760, %v268_v6  ;;  %v4136_v10 = vld [vmem:[%s4830_s2 + $0x18] sm:$0xff] (!%p226_p9)  ;;  %v294_v11 = vand.u32 (!%p226_p9), 4294901760, %v4130_v7  ;;  %v4142_v12 = vld [vmem:[%s4830_s2 + $0x20] sm:$0xff] (!%p226_p9) }
  0x24   : > { %v4147_v13 = vld [vmem:[%s4830_s2 + $0x28] sm:$0xff] (!%p226_p9)  ;;  %v297_v14 = vand.u32 (!%p226_p9), 4294901760, %v4136_v10  ;;  %v300_v16 = vand.u32 (!%p226_p9), 4294901760, %v4142_v12  ;;  %v4161_v19 = vld [vmem:[%s4830_s2 + $0x30] sm:$0xff] (!%p226_p9)  ;;  %v4166_v20 = vld [vmem:[%s4830_s2 + $0x38] sm:$0xff] (!%p226_p9)  ;;  %s4170_s6 = sshll.u32 (!%p226_p9), %s232_s22, 4 }
  0x25   : > { %v4150_v15 = vpack.c.bf16 (!%p226_p9), %v291_v9, %v288_v8  ;;  %v303_v17 = vand.u32 (!%p226_p9), 4294901760, %v4147_v13  ;;  %s234_s7 = scalar_lea.vmem (!%p226_p9), [#allocation2], %s4170_s6  ;;  %v306_v24 = vand.u32 (!%p226_p9), 4294901760, %v4161_v19  ;;  %v309_v25 = vand.u32 (!%p226_p9), 4294901760, %v4166_v20  ;;  %v4190_v26 = vld [vmem:[%s4830_s2 + $0x40] sm:$0xff] (!%p226_p9)  ;;  %v4195_v27 = vld [vmem:[%s4830_s2 + $0x48] sm:$0xff] (!%p226_p9) }
  0x26   : > { %v4156_v18 = vpack.c.bf16 (!%p226_p9), %v297_v14, %v294_v11  ;;  %v265_v21 = vld [vmem:[%s234_s7] sm:$0xff] (!%p226_p9)  ;;  %v266_v22 = vld [vmem:[%s234_s7 + $0x8] sm:$0xff] (!%p226_p9)  ;;  %v312_v30 = vand.u32 (!%p226_p9), 4294901760, %v4190_v26  ;;  %v315_v31 = vand.u32 (!%p226_p9), 4294901760, %v4195_v27  ;;  %v4252_v44 = vsub.f32 (!%p226_p9), %v267_v5, %v288_v8  ;;  %s3987_s5 = smul.u32 (!%p226_p9), 24, %s232_s22  ;;  %s264_s8 = scalar_lea.vmem (!%p226_p9), [#allocation4], %s4170_s6 }
  0x27   : > { %3429 = vmatprep.subr.bf16.mxu1 (!%p226_p9), %v4150_v15  ;;  %3525 = vmatprep.subr.bf16.mxu0 (!%p226_p9), %v4150_v15  ;;  %v4183_v23 = vpack.c.bf16 (!%p226_p9), %v303_v17, %v300_v16  ;;  %v283_v28 = vadd.f32 (!%p226_p9), %v266_v22, %v265_v21  ;;  %v4207_v32 = vpack.c.bf16 (!%p226_p9), %v309_v25, %v306_v24  ;;  %v4212_v33 = vld [vmem:[%s4830_s2 + $0x50] sm:$0xff] (!%p226_p9)  ;;  %v4217_v34 = vld [vmem:[%s4830_s2 + $0x58] sm:$0xff] (!%p226_p9)  ;;  %v4241_v41 = vld [vmem:[%s4830_s2 + $0x60] sm:$0xff] (!%p226_p9) }
  0x28   : > { %3431 = vmatpush3.bf16.msra.mxu1 (!%p226_p9), %v4150_v15  ;;  %3527 = vmatpush3.bf16.msra.mxu0 (!%p226_p9), %v4150_v15  ;;  %v4232_v38 = vpack.c.bf16 (!%p226_p9), %v315_v31, %v312_v30  ;;  %v318_v39 = vand.u32 (!%p226_p9), 4294901760, %v4212_v33  ;;  %v321_v40 = vand.u32 (!%p226_p9), 4294901760, %v4217_v34  ;;  %v4246_v42 = vld [vmem:[%s4830_s2 + $0x68] sm:$0xff] (!%p226_p9)  ;;  %v4254_v45 = vsub.f32 (!%p226_p9), %v268_v6, %v291_v9  ;;  %v4273_v51 = vld [vmem:[%s4830_s2 + $0x70] sm:$0xff] (!%p226_p9)  ;;  %v4283_v53 = vld [vmem:[%s4830_s2 + $0x78] sm:$0xff] (!%p226_p9)  ;;  %s241_s7 = scalar_lea.vmem (!%p226_p9), [#allocation3], %s3987_s5 }
  0x29   : > { %3433 = vmatprep.subr.bf16.mxu1 (!%p226_p9), %v4156_v18  ;;  %3529 = vmatprep.subr.bf16.mxu0 (!%p226_p9), %v4156_v18  ;;  %v284_v29 = vmul.f32 (!%p226_p9), 0.5, %v283_v28  ;;  %v324_v49 = vand.u32 (!%p226_p9), 4294901760, %v4241_v41  ;;  %v327_v50 = vand.u32 (!%p226_p9), 4294901760, %v4246_v42  ;;  %v4276_v52 = vsub.f32 (!%p226_p9), %v4130_v7, %v294_v11 }
  0x2a   : > { %v4266_v48 = vpack.c.bf16 %v321_v40, %v318_v39  ;;  %v391_v55 = vand.u32 4294901760, %v4252_v44  ;;  %v398_v56 = vand.u32 4294901760, %v4254_v45  ;;  %v4291_v57 = vsub.f32 %v4136_v10, %v297_v14  ;;  %s2477_s12 = sshll.u32 (%p4100_p5), %s2464_s15, 3 }
  0x2b   : > { %v4219_v35 = vsub.f32 %v265_v21, %v284_v29  ;;  %v4224_v37 = vsub.f32 %v266_v22, %v284_v29  ;;  %v330_v58 = vand.u32 4294901760, %v4273_v51  ;;  %v4304_v61 = vpack.c.bf16 %v327_v50, %v324_v49  ;;  %s2353_s10 = scalar_lea.vmem (%p4100_p5), %s4831_s3, %s2477_s12 }
  0x2c   : > { %3435 = vmatpush3.bf16.msra.mxu1 %v4156_v18  ;;  %3531 = vmatpush3.bf16.msra.mxu0 %v4156_v18  ;;  %v333_v62 = vand.u32 4294901760, %v4283_v53  ;;  %v405_v63 = vand.u32 4294901760, %v4276_v52  ;;  %v4311_v0 = vsub.f32 %v4142_v12, %v300_v16  ;;  %v392_v1 = vsub.f32 %v4252_v44, %v391_v55 }
  0x2d   : > { %3437 = vmatprep.subr.bf16.mxu1 %v4183_v23  ;;  %3533 = vmatprep.subr.bf16.mxu0 %v4183_v23  ;;  %v4222_v36 = vand.u32 4294901760, %v4219_v35  ;;  %v4258_v47 = vand.u32 4294901760, %v4224_v37  ;;  %v399_v2 = vsub.f32 %v4254_v45, %v398_v56  ;;  %v412_v3 = vand.u32 4294901760, %v4291_v57 }
  0x2e   : > { %v4321_v4 = vsub.f32 %v4147_v13, %v303_v17  ;;  %v4327_v6 = vsub.f32 %v4161_v19, %v306_v24  ;;  %v4335_v7 = vpack.c.bf16 %v333_v62, %v330_v58  ;;  %v406_v8 = vsub.f32 %v4276_v52, %v405_v63 }
  0x2f   : > { %v4250_v43 = vsub.f32 %v4219_v35, %v4222_v36  ;;  %v4296_v60 = vsub.f32 %v4224_v37, %v4258_v47  ;;  %v419_v9 = vand.u32 4294901760, %v4311_v0  ;;  %v4342_v10 = vsub.f32 %v4166_v20, %v309_v25 }
  0x30   : > { %3439 = vmatpush3.bf16.msra.mxu1 %v4183_v23  ;;  %3535 = vmatpush3.bf16.msra.mxu0 %v4183_v23  ;;  %v393_v11 = vand.u32 4294901760, %v392_v1  ;;  %v400_v12 = vand.u32 4294901760, %v399_v2  ;;  %v413_v13 = vsub.f32 %v4291_v57, %v412_v3  ;;  %v426_v14 = vand.u32 4294901760, %v4321_v4 }
  0x31   : > { %3441 = vmatprep.subr.bf16.mxu1 %v4207_v32  ;;  %3537 = vmatprep.subr.bf16.mxu0 %v4207_v32  ;;  %v370_v46 = vand.u32 4294901760, %v4250_v43  ;;  %v380_v5 = vand.u32 4294901760, %v4296_v60  ;;  %v4348_v16 = vpack.c.bf16 %v398_v56, %v391_v55  ;;  %v433_v19 = vand.u32 4294901760, %v4327_v6 }
  0x32   : > { %v407_v20 = vand.u32 4294901760, %v406_v8  ;;  %v440_v21 = vand.u32 4294901760, %v4342_v10  ;;  %v4358_v22 = vsub.f32 %v4190_v26, %v312_v30  ;;  %v4363_v24 = vsub.f32 %v4195_v27, %v315_v31 }
  0x33   : > { %v371_v54 = vsub.f32 %v4250_v43, %v370_v46  ;;  %2935 = vmatprep.mubr.f32.mxu0 %v370_v46  ;;  %v381_v17 = vsub.f32 %v4296_v60, %v380_v5  ;;  %v4367_v25 = vpack.c.bf16 %v400_v12, %v393_v11  ;;  %v414_v28 = vand.u32 4294901760, %v413_v13 }
  0x34   : > { %3443 = vmatpush3.bf16.msra.mxu1 %v4207_v32  ;;  %3539 = vmatpush3.bf16.msra.mxu0 %v4207_v32  ;;  %v420_v29 = vsub.f32 %v4311_v0, %v419_v9  ;;  %v427_v46 = vsub.f32 %v4321_v4, %v426_v14  ;;  %v434_v26 = vsub.f32 %v4327_v6, %v433_v19  ;;  %v447_v31 = vand.u32 4294901760, %v4358_v22 }
  0x35   : > { %3445 = vmatprep.subr.bf16.mxu1 %v4232_v38  ;;  %3541 = vmatprep.subr.bf16.mxu0 %v4232_v38  ;;  %v372_v59 = vand.u32 4294901760, %v371_v54  ;;  %v382_v54 = vand.u32 4294901760, %v381_v17  ;;  %v4375_v30 = vsub.f32 %v4212_v33, %v318_v39  ;;  %v441_v27 = vsub.f32 %v4342_v10, %v440_v21 }
  0x36   : > { %v454_v55 = vand.u32 4294901760, %v4363_v24  ;;  %v4385_v56 = vsub.f32 %v4217_v34, %v321_v40  ;;  %v4389_v33 = vpack.c.bf16 %v414_v28, %v407_v20  ;;  %v4391_v39 = vpack.c.bf16 %v412_v3, %v405_v63 }
  0x37   : > { %2830 = vmatprep.mubr.f32.mxu1 %v372_v59  ;;  %v421_v59 = vand.u32 4294901760, %v420_v29  ;;  %v428_v1 = vand.u32 4294901760, %v427_v46  ;;  %v4393_v2 = vpack.c.bf16 %v426_v14, %v419_v9  ;;  %v435_v8 = vand.u32 4294901760, %v434_v26 }
  0x38   : > { %3447 = vmatpush3.bf16.msra.mxu1 %v4232_v38  ;;  %3543 = vmatpush3.bf16.msra.mxu0 %v4232_v38  ;;  %v461_v11 = vand.u32 4294901760, %v4375_v30  ;;  %v442_v34 = vand.u32 4294901760, %v441_v27  ;;  %v448_v40 = vsub.f32 %v4358_v22, %v447_v31  ;;  %v455_v12 = vsub.f32 %v4363_v24, %v454_v55 }
  0x39   : > { %3449 = vmatprep.subr.bf16.mxu1 %v4266_v48  ;;  %3545 = vmatprep.subr.bf16.mxu0 %v4266_v48  ;;  %v468_v63 = vand.u32 4294901760, %v4385_v56  ;;  %v4403_v3 = vpack.c.bf16 %v428_v1, %v421_v59  ;;  %v4413_v9 = vsub.f32 %v4246_v42, %v327_v50  ;;  %v4417_v13 = vpack.c.bf16 %v440_v21, %v433_v19 }
  0x3a   : > { %v462_v14 = vsub.f32 %v4375_v30, %v461_v11  ;;  %v4422_v17 = vpack.c.bf16 %v442_v34, %v435_v8  ;;  %v4432_v19 = vsub.f32 %v4273_v51, %v330_v58  ;;  %v4437_v21 = vsub.f32 %v4283_v53, %v333_v62 }
  0x3b   : > { %v469_v20 = vsub.f32 %v4385_v56, %v468_v63  ;;  %v482_v50 = vand.u32 4294901760, %v4413_v9  ;;  %v4443_v29 = vpack.c.bf16 %v454_v55, %v447_v31  ;;  %v4455_v27 = vpack.c.bf16 %v468_v63, %v461_v11 }
  0x3c   : > { %3451 = vmatpush3.bf16.msra.mxu1 %v4266_v48  ;;  %3547 = vmatpush3.bf16.msra.mxu0 %v4266_v48  ;;  %v463_v46 = vand.u32 4294901760, %v462_v14  ;;  %v489_v53 = vand.u32 4294901760, %v4432_v19  ;;  %v496_v62 = vand.u32 4294901760, %v4437_v21  ;;  %v4483_v14 = vpack.c.bf16 %v4254_v45, %v4252_v44 }
  0x3d   : > { %3453 = vmatprep.subr.bf16.mxu1 %v4304_v61  ;;  %3549 = vmatprep.subr.bf16.mxu0 %v4304_v61  ;;  %v483_v58 = vsub.f32 %v4413_v9, %v482_v50  ;;  %v4501_v44 = vpack.c.bf16 %v4321_v4, %v4311_v0  ;;  %v4511_v45 = vpack.c.bf16 %v4342_v10, %v4327_v6  ;;  %v4043_v6 = vmov 0.0|0.0  }
  0x3e   : > { %v490_v59 = vsub.f32 %v4432_v19, %v489_v53  ;;  %v497_v1 = vsub.f32 %v4437_v21, %v496_v62  ;;  %v4475_v63 = vpack.c.bf16 %v496_v62, %v489_v53  ;;  %v971_v0 = vmul.f32 %v4219_v35, %v4219_v35 }
  0x3f   : > { %v484_v55 = vand.u32 4294901760, %v483_v58  ;;  %v972_v4 = vmul.f32 %v4224_v37, %v4224_v37 }
  0x40   : > { %3455 = vmatpush3.bf16.msra.mxu1 %v4304_v61  ;;  %3551 = vmatpush3.bf16.msra.mxu0 %v4304_v61  ;;  %v491_v34 = vand.u32 4294901760, %v490_v59 }
  0x41   : > { %3457 = vmatprep.subr.bf16.mxu1 %v4335_v7  ;;  %3553 = vmatprep.subr.bf16.mxu0 %v4335_v7  ;;  %v973_v10 = vadd.f32 %v972_v4, %v971_v0 }
  0x44   : > { %3459 = vmatpush3.bf16.msra.mxu1 %v4335_v7  ;;  %3555 = vmatpush3.bf16.msra.mxu0 %v4335_v7 }
  0x45   : > { %3461 = vmatprep.subr.bf16.mxu1 %v4367_v25  ;;  %3557 = vmatprep.subr.bf16.mxu0 %v4348_v16 }
  0x47   : > { %2831 = vmatmul.mubr.f32.vlgmr.msra.gmra.mrb[0].mxu1 %v382_v54  ;;  %2936 = vmatmul.mubr.f32.vlgmr.msra.gmra.mrb[0].mxu0 %v380_v5  ;;  %v4408_v5 = vsub.f32 %v4241_v41, %v324_v49  ;;  %v449_v41 = vand.u32 4294901760, %v448_v40  ;;  %v456_v49 = vand.u32 4294901760, %v455_v12  ;;  %v470_v54 = vand.u32 4294901760, %v469_v20 }
  0x48   : > { %3463 = vmatpush3.bf16.msra.mxu1 %v4367_v25  ;;  %3559 = vmatpush3.bf16.msra.mxu0 %v4348_v16  ;;  %v498_v40 = vand.u32 4294901760, %v497_v1 }
  0x49   : > { %3465 = vmatprep.subr.bf16.mxu1 %v4389_v33  ;;  %3561 = vmatprep.subr.bf16.mxu0 %v4391_v39  ;;  %v475_v42 = vand.u32 4294901760, %v4408_v5  ;;  %v4441_v28 = vpack.c.bf16 %v456_v49, %v449_v41  ;;  %v4453_v26 = vpack.c.bf16 %v470_v54, %v463_v46  ;;  %v4491_v41 = vpack.c.bf16 %v4291_v57, %v4276_v52 }
  0x4a   : > { %2865 = vmatprep.mubr.f32.mxu1 %v4222_v36  ;;  %2970 = vmatprep.mubr.f32.mxu0 %v4222_v36  ;;  %v4473_v12 = vpack.c.bf16 %v498_v40, %v491_v34  ;;  %v4535_v52 = vpack.c.bf16 %v4413_v9, %v4408_v5  ;;  %v4543_v57 = vpack.c.bf16 %v4437_v21, %v4432_v19 }
  0x4b   : > { %v476_v51 = vsub.f32 %v4408_v5, %v475_v42  ;;  %v4467_v11 = vpack.c.bf16 %v482_v50, %v475_v42 }
  0x4c   : > { %3467 = vmatpush3.bf16.msra.mxu1 %v4389_v33  ;;  %3563 = vmatpush3.bf16.msra.mxu0 %v4391_v39 }
  0x4d   : > { %3469 = vmatprep.subr.bf16.mxu1 %v4403_v3  ;;  %3565 = vmatprep.subr.bf16.mxu0 %v4393_v2  ;;  %v477_v31 = vand.u32 4294901760, %v476_v51 }
  0x4f   : > { %v4465_v8 = vpack.c.bf16 %v484_v55, %v477_v31 }
  0x50   : > { %3471 = vmatpush3.bf16.msra.mxu1 %v4403_v3  ;;  %3567 = vmatpush3.bf16.msra.mxu0 %v4393_v2 }
  0x51   : > { %3473 = vmatprep.subr.bf16.mxu1 %v4422_v17  ;;  %3569 = vmatprep.subr.bf16.mxu0 %v4417_v13 }
  0x54   : > { %3475 = vmatpush3.bf16.msra.mxu1 %v4422_v17  ;;  %3571 = vmatpush3.bf16.msra.mxu0 %v4417_v13 }
  0x55   : > { %3477 = vmatprep.subr.bf16.mxu1 %v4441_v28  ;;  %3573 = vmatprep.subr.bf16.mxu0 %v4443_v29 }
  0x58   : > { %3479 = vmatpush3.bf16.msra.mxu1 %v4441_v28  ;;  %3575 = vmatpush3.bf16.msra.mxu0 %v4443_v29 }
  0x59   : > { %3481 = vmatprep.subr.bf16.mxu1 %v4453_v26  ;;  %3577 = vmatprep.subr.bf16.mxu0 %v4455_v27 }
  0x5c   : > { %3483 = vmatpush3.bf16.msra.mxu1 %v4453_v26  ;;  %3579 = vmatpush3.bf16.msra.mxu0 %v4455_v27 }
  0x5d   : > { %3485 = vmatprep.subr.bf16.mxu1 %v4465_v8  ;;  %3581 = vmatprep.subr.bf16.mxu0 %v4467_v11 }
  0x60   : > { %3487 = vmatpush3.bf16.msra.mxu1 %v4465_v8  ;;  %3583 = vmatpush3.bf16.msra.mxu0 %v4467_v11 }
  0x61   : > { %3489 = vmatprep.subr.bf16.mxu1 %v4473_v12  ;;  %3585 = vmatprep.subr.bf16.mxu0 %v4475_v63 }
  0x64   : > { %3491 = vmatpush3.bf16.msra.mxu1 %v4473_v12  ;;  %3587 = vmatpush3.bf16.msra.mxu0 %v4475_v63 }
  0x65   : > { %3493 = vmatprep.subr.bf16.mxu1 %v4483_v14  ;;  %3589 = vmatprep.subr.bf16.mxu0 %v4150_v15 }
  0x67   : > { %2866 = vmatmul.mubr.f32.vlgmr.msra.gmra.mrb[0].mxu1 %v4258_v47  ;;  %2971 = vmatmul.mubr.f32.vlgmr.msra.gmra.mrb[0].mxu0 %v4258_v47 }
  0x68   : > { %3495 = vmatpush3.bf16.msra.mxu1 %v4483_v14  ;;  %3591 = vmatpush3.bf16.msra.mxu0 %v4150_v15 }
  0x69   : > { %3497 = vmatprep.subr.bf16.mxu1 %v4491_v41  ;;  %3593 = vmatprep.subr.bf16.mxu0 %v4156_v18 }
  0x6a   : > { %2900 = vmatprep.mubr.f32.mxu1 %v4250_v43  ;;  %3005 = vmatprep.mubr.f32.mxu0 %v4222_v36  ;;  %v4519_v36 = vpack.c.bf16 %v4363_v24, %v4358_v22  ;;  %v4527_v43 = vpack.c.bf16 %v4385_v56, %v4375_v30  ;;  %v4045_v22 = vmov 0.0   ;;  %v974_v24 = vmul.f32 0.5, %v973_v10 }
  0x6c   : > { %3499 = vmatpush3.bf16.msra.mxu1 %v4491_v41  ;;  %3595 = vmatpush3.bf16.msra.mxu0 %v4156_v18 }
  0x6d   : > { %3501 = vmatprep.subr.bf16.mxu1 %v4501_v44  ;;  %3597 = vmatprep.subr.bf16.mxu0 %v4183_v23 }
  0x70   : > { %3503 = vmatpush3.bf16.msra.mxu1 %v4501_v44  ;;  %3599 = vmatpush3.bf16.msra.mxu0 %v4183_v23 }
  0x71   : > { %3505 = vmatprep.subr.bf16.mxu1 %v4511_v45  ;;  %3601 = vmatprep.subr.bf16.mxu0 %v4207_v32 }
  0x74   : > { %3507 = vmatpush3.bf16.msra.mxu1 %v4511_v45  ;;  %3603 = vmatpush3.bf16.msra.mxu0 %v4207_v32 }
  0x75   : > { %3509 = vmatprep.subr.bf16.mxu1 %v4519_v36  ;;  %3605 = vmatprep.subr.bf16.mxu0 %v4232_v38 }
  0x78   : > { %3511 = vmatpush3.bf16.msra.mxu1 %v4519_v36  ;;  %3607 = vmatpush3.bf16.msra.mxu0 %v4232_v38 }
  0x79   : > { %3513 = vmatprep.subr.bf16.mxu1 %v4527_v43  ;;  %3609 = vmatprep.subr.bf16.mxu0 %v4266_v48 }
  0x7c   : > { %3515 = vmatpush3.bf16.msra.mxu1 %v4527_v43  ;;  %3611 = vmatpush3.bf16.msra.mxu0 %v4266_v48 }
  0x7d   : > { %3517 = vmatprep.subr.bf16.mxu1 %v4535_v52  ;;  %3613 = vmatprep.subr.bf16.mxu0 %v4304_v61 }
  0x80   : > { %3519 = vmatpush3.bf16.msra.mxu1 %v4535_v52  ;;  %3615 = vmatpush3.bf16.msra.mxu0 %v4304_v61 }
  0x81   : > { %3521 = vmatprep.subr.bf16.mxu1 %v4543_v57  ;;  %3617 = vmatprep.subr.bf16.mxu0 %v4335_v7 }
  0x84   : > { %3523 = vmatpush3.bf16.msra.mxu1 %v4543_v57  ;;  %3619 = vmatpush3.bf16.msra.mxu0 %v4335_v7 }
  0x85   : > { %3620 = vmatprep.subr.bf16.mxu1 %v4043_v6  ;;  %3765 = vmatprep.subr.bf16.mxu0 %v4150_v15 }
  0x87   : > { %2901 = vmatmul.mubr.f32.vlgmr.msra.gmra.mrb[0].mxu1 %v4296_v60  ;;  %3006 = vmatmul.mubr.f32.vlgmr.msra.gmra.mrb[0].mxu0 %v4258_v47  ;;  %v4569_v47 = vadd.f32 1e-05, %v974_v24 }
  0x88   : > { %3622 = vmatpush3.bf16.msra.mxu1 %v4150_v15  ;;  %3040 = vmatprep.mubr.msk.f32.mxu1 %vm4044_vm0, %v4045_v22 }
  0x89   : > { %3623 = vmatprep.subr.bf16.mxu1 %v4043_v6  ;;  %3767 = vmatpush3.bf16.msra.mxu0 %v4150_v15  ;;  %v4576_v60 = vand.u32 4294901760, %v4569_v47 }
  0x8a   : > { %3769 = vmatprep.subr.bf16.mxu0 %v4156_v18 }
  0x8b   : > { %v4584_v30 = vsub.f32 %v4569_v47, %v4576_v60 }
  0x8c   : > { %3625 = vmatpush3.bf16.msra.mxu1 %v4156_v18 }
  0x8d   : > { %3626 = vmatprep.subr.bf16.mxu1 %v4043_v6  ;;  %3771 = vmatpush3.bf16.msra.mxu0 %v4156_v18  ;;  %v1059_v56 = vand.u32 4294901760, %v4584_v30 }
  0x8e   : > { %3773 = vmatprep.subr.bf16.mxu0 %v4183_v23 }
  0x8f   : > { %v1060_v5 = vsub.f32 %v4584_v30, %v1059_v56 }
  0x90   : > { %3628 = vmatpush3.bf16.msra.mxu1 %v4183_v23 }
  0x91   : > { %3629 = vmatprep.subr.bf16.mxu1 %v4043_v6  ;;  %3775 = vmatpush3.bf16.msra.mxu0 %v4183_v23  ;;  %v1061_v9 = vand.u32 4294901760, %v1060_v5 }
  0x92   : > { %3777 = vmatprep.subr.bf16.mxu0 %v4207_v32 }
  0x94   : > { %3631 = vmatpush3.bf16.msra.mxu1 %v4207_v32 }
  0x95   : > { %3632 = vmatprep.subr.bf16.mxu1 %v4043_v6  ;;  %3779 = vmatpush3.bf16.msra.mxu0 %v4207_v32 }
  0x96   : > { %3781 = vmatprep.subr.bf16.mxu0 %v4232_v38 }
  0x98   : > { %3634 = vmatpush3.bf16.msra.mxu1 %v4232_v38 }
  0x99   : > { %3635 = vmatprep.subr.bf16.mxu1 %v4043_v6  ;;  %3783 = vmatpush3.bf16.msra.mxu0 %v4232_v38 }
  0x9a   : > { %3785 = vmatprep.subr.bf16.mxu0 %v4266_v48 }
  0x9c   : > { %3637 = vmatpush3.bf16.msra.mxu1 %v4266_v48 }
  0x9d   : > { %3638 = vmatprep.subr.bf16.mxu1 %v4043_v6  ;;  %3787 = vmatpush3.bf16.msra.mxu0 %v4266_v48 }
  0x9e   : > { %3789 = vmatprep.subr.bf16.mxu0 %v4304_v61 }
  0xa0   : > { %3640 = vmatpush3.bf16.msra.mxu1 %v4304_v61 }
  0xa1   : > { %3641 = vmatprep.subr.bf16.mxu1 %v4043_v6  ;;  %3791 = vmatpush3.bf16.msra.mxu0 %v4304_v61 }
  0xa2   : > { %3793 = vmatprep.subr.bf16.mxu0 %v4335_v7 }
  0xa4   : > { %3643 = vmatpush3.bf16.msra.mxu1 %v4335_v7 }
  0xa5   : > { %3644 = vmatprep.subr.bf16.mxu1 %v4043_v6  ;;  %3795 = vmatpush3.bf16.msra.mxu0 %v4335_v7 }
  0xa6   : > { %3797 = vmatprep.subr.bf16.mxu0 %v4367_v25 }
  0xa7   : > { %3041 = vmatmul.mubr.f32.vlgmr.msra.gmra.mrb[2].mxu1 %v1061_v9 }
  0xa8   : > { %3646 = vmatpush3.bf16.msra.mxu1 %v4367_v25  ;;  %3075 = vmatprep.mubr.msk.f32.mxu1 %vm4044_vm0, %v4045_v22 }
  0xa9   : > { %3647 = vmatprep.subr.bf16.mxu1 %v4043_v6 }
  0xac   : > { %3649 = vmatpush3.bf16.msra.mxu1 %v4389_v33 }
  0xad   : > { %3650 = vmatprep.subr.bf16.mxu1 %v4043_v6 }
  0xb0   : > { %3652 = vmatpush3.bf16.msra.mxu1 %v4403_v3 }
  0xb1   : > { %3653 = vmatprep.subr.bf16.mxu1 %v4043_v6 }
  0xb4   : > { %3655 = vmatpush3.bf16.msra.mxu1 %v4422_v17 }
  0xb5   : > { %3656 = vmatprep.subr.bf16.mxu1 %v4043_v6 }
  0xb8   : > { %3658 = vmatpush3.bf16.msra.mxu1 %v4441_v28 }
  0xb9   : > { %3659 = vmatprep.subr.bf16.mxu1 %v4043_v6 }
  0xbc   : > { %3661 = vmatpush3.bf16.msra.mxu1 %v4453_v26 }
  0xbd   : > { %3662 = vmatprep.subr.bf16.mxu1 %v4043_v6 }
  0xc0   : > { %3664 = vmatpush3.bf16.msra.mxu1 %v4465_v8 }
  0xc1   : > { %3665 = vmatprep.subr.bf16.mxu1 %v4043_v6 }
  0xc4   : > { %3667 = vmatpush3.bf16.msra.mxu1 %v4473_v12 }
  0xc5   : > { %3668 = vmatprep.subr.bf16.mxu1 %v4043_v6 }
  0xc7   : > { %3076 = vmatmul.mubr.f32.vlgmr.msra.gmra.mrb[2].mxu1 %v4576_v60 }
  0xc8   : > { %3670 = vmatpush3.bf16.msra.mxu1 %v4483_v14  ;;  %3110 = vmatprep.mubr.msk.f32.mxu1 %vm4044_vm0, %v4045_v22 }
  0xc9   : > { %3671 = vmatprep.subr.bf16.mxu1 %v4043_v6 }
  0xcc   : > { %3673 = vmatpush3.bf16.msra.mxu1 %v4491_v41 }
  0xcd   : > { %3674 = vmatprep.subr.bf16.mxu1 %v4043_v6 }
  0xd0   : > { %3676 = vmatpush3.bf16.msra.mxu1 %v4501_v44 }
  0xd1   : > { %3677 = vmatprep.subr.bf16.mxu1 %v4043_v6 }
  0xd4   : > { %3679 = vmatpush3.bf16.msra.mxu1 %v4511_v45 }
  0xd5   : > { %3680 = vmatprep.subr.bf16.mxu1 %v4043_v6 }
  0xd8   : > { %3682 = vmatpush3.bf16.msra.mxu1 %v4519_v36 }
  0xd9   : > { %3683 = vmatprep.subr.bf16.mxu1 %v4043_v6 }
  0xdc   : > { %3685 = vmatpush3.bf16.msra.mxu1 %v4527_v43 }
  0xdd   : > { %3686 = vmatprep.subr.bf16.mxu1 %v4043_v6 }
  0xe0   : > { %3688 = vmatpush3.bf16.msra.mxu1 %v4535_v52 }
  0xe1   : > { %3689 = vmatprep.subr.bf16.mxu1 %v4043_v6 }
  0xe4   : > { %3691 = vmatpush3.bf16.msra.mxu1 %v4543_v57 }
  0xe5   : > { %3692 = vmatprep.subr.bf16.mxu1 %v4043_v6 }
  0xe7   : > { %3111 = vmatmul.mubr.f32.vlgmr.msra.gmra.mrb[2].mxu1 %v4584_v30 }
  0xe8   : > { %3694 = vmatpush3.bf16.msra.mxu1 %v4150_v15  ;;  %3145 = vmatprep.mubr.msk.f32.mxu1 %vm4044_vm0, %v4045_v22 }
  0xe9   : > { %3695 = vmatprep.subr.bf16.mxu1 %v4043_v6 }
  0xec   : > { %3697 = vmatpush3.bf16.msra.mxu1 %v4156_v18 }
  0xed   : > { %3698 = vmatprep.subr.bf16.mxu1 %v4043_v6 }
  0xf0   : > { %3700 = vmatpush3.bf16.msra.mxu1 %v4183_v23 }
  0xf1   : > { %3701 = vmatprep.subr.bf16.mxu1 %v4043_v6 }
  0xf4   : > { %3703 = vmatpush3.bf16.msra.mxu1 %v4207_v32 }
  0xf5   : > { %3704 = vmatprep.subr.bf16.mxu1 %v4043_v6 }
  0xf8   : > { %3706 = vmatpush3.bf16.msra.mxu1 %v4232_v38 }
  0xf9   : > { %3707 = vmatprep.subr.bf16.mxu1 %v4043_v6 }
  0xfc   : > { %3709 = vmatpush3.bf16.msra.mxu1 %v4266_v48 }
  0xfd   : > { %3710 = vmatprep.subr.bf16.mxu1 %v4043_v6 }
 0x100   : > { %3712 = vmatpush3.bf16.msra.mxu1 %v4304_v61 }
 0x101   : > { %3713 = vmatprep.subr.bf16.mxu1 %v4043_v6 }
 0x104   : > { %3715 = vmatpush3.bf16.msra.mxu1 %v4335_v7 }
 0x105   : > { %3716 = vmatprep.subr.bf16.mxu1 %v4043_v6 }
 0x107   : > { %3146 = vmatmul.mubr.f32.vlgmr.msra.gmra.mrb[2].mxu1 %v1059_v56 }
 0x108   : > { %3718 = vmatpush3.bf16.msra.mxu1 %v4348_v16  ;;  %3180 = vmatprep.mubr.msk.f32.mxu1 %vm4044_vm0, %v4045_v22 }
 0x109   : > { %3719 = vmatprep.subr.bf16.mxu1 %v4043_v6 }
 0x10c   : > { %3721 = vmatpush3.bf16.msra.mxu1 %v4391_v39 }
 0x10d   : > { %3722 = vmatprep.subr.bf16.mxu1 %v4043_v6 }
 0x110   : > { %3724 = vmatpush3.bf16.msra.mxu1 %v4393_v2 }
 0x111   : > { %3725 = vmatprep.subr.bf16.mxu1 %v4043_v6 }
 0x114   : > { %3727 = vmatpush3.bf16.msra.mxu1 %v4417_v13 }
 0x115   : > { %3728 = vmatprep.subr.bf16.mxu1 %v4043_v6 }
 0x118   : > { %3730 = vmatpush3.bf16.msra.mxu1 %v4443_v29 }
 0x119   : > { %3731 = vmatprep.subr.bf16.mxu1 %v4043_v6 }
 0x11c   : > { %3733 = vmatpush3.bf16.msra.mxu1 %v4455_v27 }
 0x11d   : > { %3734 = vmatprep.subr.bf16.mxu1 %v4043_v6 }
 0x120   : > { %3736 = vmatpush3.bf16.msra.mxu1 %v4467_v11 }
 0x121   : > { %3737 = vmatprep.subr.bf16.mxu1 %v4043_v6 }
 0x124   : > { %3739 = vmatpush3.bf16.msra.mxu1 %v4475_v63 }
 0x125   : > { %3740 = vmatprep.subr.bf16.mxu1 %v4043_v6 }
 0x127   : > { %3181 = vmatmul.mubr.f32.vlgmr.msra.gmra.mrb[2].mxu1 %v4576_v60 }
 0x128   : > { %3742 = vmatpush3.bf16.msra.mxu1 %v4150_v15  ;;  %3215 = vmatprep.mubr.msk.f32.mxu1 %vm4044_vm0, %v4045_v22 }
 0x129   : > { %3743 = vmatprep.subr.bf16.mxu1 %v4043_v6 }
 0x12c   : > { %3745 = vmatpush3.bf16.msra.mxu1 %v4156_v18 }
 0x12d   : > { %3746 = vmatprep.subr.bf16.mxu1 %v4043_v6 }
 0x130   : > { %3748 = vmatpush3.bf16.msra.mxu1 %v4183_v23 }
 0x131   : > { %3749 = vmatprep.subr.bf16.mxu1 %v4043_v6 }
 0x134   : > { %3751 = vmatpush3.bf16.msra.mxu1 %v4207_v32 }
 0x135   : > { %3752 = vmatprep.subr.bf16.mxu1 %v4043_v6 }
 0x138   : > { %3754 = vmatpush3.bf16.msra.mxu1 %v4232_v38 }
 0x139   : > { %3755 = vmatprep.subr.bf16.mxu1 %v4043_v6 }
 0x13c   : > { %3757 = vmatpush3.bf16.msra.mxu1 %v4266_v48 }
 0x13d   : > { %3758 = vmatprep.subr.bf16.mxu1 %v4043_v6 }
 0x140   : > { %3760 = vmatpush3.bf16.msra.mxu1 %v4304_v61 }
 0x141   : > { %3761 = vmatprep.subr.bf16.mxu1 %v4043_v6 }
 0x144   : > { %3763 = vmatpush3.bf16.msra.mxu1 %v4335_v7 }
 0x147   : > { %3216 = vmatmul.mubr.f32.vlgmr.msra.gmra.mrb[2].mxu1 %v4576_v60 }
 0x15a   : > { %v2902_v49 = vpop.f32.mrb[0].mxu1  ;;  %v3007_v20 = vpop.f32.mrb[0].mxu0 }
 0x15b   : > { %v3956_v42 = vadd.f32 %v3007_v20, %v2902_v49  ;;  %v645_v50 = vpop.f32.mrb[1].mxu1  ;;  %v961_v19 = vpop.f32.mrb[1].mxu0 }
 0x15c   : > { %v3957_v21 = vadd.f32 %v961_v19, %v645_v50 }
 0x15d   : > { %v1618_v46 = vmul.f32 %v3956_v42, %v4224_v37 }
 0x15e   : > { %v1617_v54 = vmul.f32 %v3957_v21, %v4219_v35 }
 0x160   : > { %v1619_v51 = vadd.f32 %v1618_v46, %v1617_v54 }
 0x162   : > { %v1620_v58 = vmul.f32 0.5, %v1619_v51 }
 0x164   : > { %v1623_v62 = vmul.f32 %v1620_v58, %v1620_v58  ;;  %v1638_v30 = vsub.f32 0.0, %v1620_v58 }
 0x21a   : > { %v1613_v53 = vpop.f32.mrb[2].mxu1 }
 0x21b   : > { %v1622_v31 = vmul.f32 %v1613_v53, %v4569_v47  ;;  %v3217_v55 = vpop.f32.mrb[3].mxu1  ;;  %v1621_v6 = vadd.f32 %v1613_v53, %v4569_v47 }
 0x21d   : > { %v1624_v59 = vsub.f32 %v1622_v31, %v1623_v62 }
 0x21f   : > { %4015 = vrsqrt.f32 %v1624_v59  ;;  %vm1627_vm1 = vcmp.eq.f32.partialorder %v1624_v59, inf  ;;  %v1630_v40 = vand.u32 2147483648, %v1624_v59  ;;  %vm1629_vm2 = vcmp.eq.f32.partialorder %v1624_v59, 0.0 }
 0x229   : > { %v4016_v1 = vpop.eup %4015 }
 0x22a   : > { %v1626_v34 = vmul.f32 %v4016_v1, %v1624_v59 }
 0x22c   : > { %v1628_v0 = vsel %vm1627_vm1, %v1624_v59, %v1626_v34 }
 0x22d   : > { %v1631_v4 = vsel %vm1629_vm2, %v1630_v40, %v1628_v0 }
 0x22e   : > { %v1632_v10 = vmul.f32 2.0, %v1631_v4  ;;  %v1636_v22 = vadd.f32 %v1631_v4, %v1613_v53 }
 0x230   : > { %v1633_v24 = vadd.f32 %v1632_v10, %v1621_v6 }
 0x232   : > { %v1634_v60 = vmul.f32 %v1633_v24, %v1624_v59 }
 0x234   : > { %4017 = vrsqrt.f32 %v1634_v60 }
 0x23e   : > { %v4018_v56 = vpop.eup %4017 }
 0x23f   : > { %v1637_v5 = vmul.f32 %v4018_v56, %v1636_v22  ;;  %v1639_v9 = vmul.f32 %v4018_v56, %v1638_v30 }
 0x241   : > { %v1640_v49 = vmul.f32 %v1637_v5, %v4219_v35  ;;  %v1641_v20 = vmul.f32 %v1637_v5, %v4224_v37  ;;  %v1642_v50 = vmul.f32 %v3957_v21, %v1639_v9  ;;  %v1643_v19 = vmul.f32 %v3956_v42, %v1639_v9 }
 0x243   : > { %v4707_v46 = vadd.f32 %v1642_v50, %v1640_v49  ;;  %v4709_v54 = vadd.f32 %v1643_v19, %v1641_v20 }
 0x245   : > { %v4712_v47 = vand.u32 4294901760, %v4707_v46  ;;  %v4715_v51 = vand.u32 4294901760, %v4709_v54 }
 0x247   : > { %v1728_v58 = vsub.f32 %v4707_v46, %v4712_v47  ;;  %v1738_v35 = vsub.f32 %v4709_v54, %v4715_v51 }
 0x249   : > { %v1729_v53 = vand.u32 4294901760, %v1728_v58  ;;  %v1739_v37 = vand.u32 4294901760, %v1738_v35 }
 0x24b   : > { %v1730_v21 = vsub.f32 %v1728_v58, %v1729_v53  ;;  %v1740_v42 = vsub.f32 %v1738_v35, %v1739_v37 }
 0x24d   : > { %v1731_v62 = vand.u32 4294901760, %v1730_v21  ;;  %v1741_v31 = vand.u32 4294901760, %v1740_v42 }
 0x24f   : > { %3250 = vmatprep.mubr.f32.mxu0 %v1731_v62 }
 0x250   : > { %3251 = vmatmul.mubr.f32.vlgmr.msra.gmra.mrb[2].mxu0 %v1741_v31 }
 0x251   : > { %3799 = vmatpush3.bf16.msra.mxu0 %v4367_v25  ;;  %3285 = vmatprep.mubr.f32.mxu0 %v4712_v47 }
 0x252   : > { %3801 = vmatprep.subr.bf16.mxu0 %v4389_v33 }
 0x255   : > { %3803 = vmatpush3.bf16.msra.mxu0 %v4389_v33 }
 0x256   : > { %3805 = vmatprep.subr.bf16.mxu0 %v4403_v3 }
 0x259   : > { %3807 = vmatpush3.bf16.msra.mxu0 %v4403_v3 }
 0x25a   : > { %3809 = vmatprep.subr.bf16.mxu0 %v4422_v17 }
 0x25d   : > { %3811 = vmatpush3.bf16.msra.mxu0 %v4422_v17 }
 0x25e   : > { %3813 = vmatprep.subr.bf16.mxu0 %v4441_v28 }
 0x261   : > { %3815 = vmatpush3.bf16.msra.mxu0 %v4441_v28 }
 0x262   : > { %3817 = vmatprep.subr.bf16.mxu0 %v4453_v26 }
 0x265   : > { %3819 = vmatpush3.bf16.msra.mxu0 %v4453_v26 }
 0x266   : > { %3821 = vmatprep.subr.bf16.mxu0 %v4465_v8 }
 0x269   : > { %3823 = vmatpush3.bf16.msra.mxu0 %v4465_v8 }
 0x26a   : > { %3825 = vmatprep.subr.bf16.mxu0 %v4473_v12 }
 0x26d   : > { %3827 = vmatpush3.bf16.msra.mxu0 %v4473_v12 }
 0x26e   : > { %3829 = vmatprep.subr.bf16.mxu0 %v4483_v14 }
 0x270   : > { %3286 = vmatmul.mubr.f32.vlgmr.msra.gmra.mrb[2].mxu0 %v4715_v51 }
 0x271   : > { %3831 = vmatpush3.bf16.msra.mxu0 %v4483_v14  ;;  %3320 = vmatprep.mubr.f32.mxu0 %v1728_v58 }
 0x272   : > { %3833 = vmatprep.subr.bf16.mxu0 %v4491_v41 }
 0x275   : > { %3835 = vmatpush3.bf16.msra.mxu0 %v4491_v41 }
 0x276   : > { %3837 = vmatprep.subr.bf16.mxu0 %v4501_v44 }
 0x279   : > { %3839 = vmatpush3.bf16.msra.mxu0 %v4501_v44 }
 0x27a   : > { %3841 = vmatprep.subr.bf16.mxu0 %v4511_v45 }
 0x27d   : > { %3843 = vmatpush3.bf16.msra.mxu0 %v4511_v45 }
 0x27e   : > { %3845 = vmatprep.subr.bf16.mxu0 %v4519_v36 }
 0x281   : > { %3847 = vmatpush3.bf16.msra.mxu0 %v4519_v36 }
 0x282   : > { %3849 = vmatprep.subr.bf16.mxu0 %v4527_v43 }
 0x285   : > { %3851 = vmatpush3.bf16.msra.mxu0 %v4527_v43 }
 0x286   : > { %3853 = vmatprep.subr.bf16.mxu0 %v4535_v52 }
 0x289   : > { %3855 = vmatpush3.bf16.msra.mxu0 %v4535_v52 }
 0x28a   : > { %3857 = vmatprep.subr.bf16.mxu0 %v4543_v57 }
 0x28d   : > { %3859 = vmatpush3.bf16.msra.mxu0 %v4543_v57 }
 0x28e   : > { %3861 = vmatprep.subr.bf16.mxu0 %v4150_v15 }
 0x290   : > { %3321 = vmatmul.mubr.f32.vlgmr.msra.gmra.mrb[2].mxu0 %v1738_v35 }
 0x291   : > { %3863 = vmatpush3.bf16.msra.mxu0 %v4150_v15  ;;  %3355 = vmatprep.mubr.f32.mxu0 %v1729_v53 }
 0x292   : > { %3865 = vmatprep.subr.bf16.mxu0 %v4156_v18 }
 0x295   : > { %3867 = vmatpush3.bf16.msra.mxu0 %v4156_v18 }
 0x296   : > { %3869 = vmatprep.subr.bf16.mxu0 %v4183_v23 }
 0x299   : > { %3871 = vmatpush3.bf16.msra.mxu0 %v4183_v23 }
 0x29a   : > { %3873 = vmatprep.subr.bf16.mxu0 %v4207_v32 }
 0x29d   : > { %3875 = vmatpush3.bf16.msra.mxu0 %v4207_v32 }
 0x29e   : > { %3877 = vmatprep.subr.bf16.mxu0 %v4232_v38 }
 0x2a1   : > { %3879 = vmatpush3.bf16.msra.mxu0 %v4232_v38 }
 0x2a2   : > { %3881 = vmatprep.subr.bf16.mxu0 %v4266_v48 }
 0x2a5   : > { %3883 = vmatpush3.bf16.msra.mxu0 %v4266_v48 }
 0x2a6   : > { %3885 = vmatprep.subr.bf16.mxu0 %v4304_v61 }
 0x2a9   : > { %3887 = vmatpush3.bf16.msra.mxu0 %v4304_v61 }
 0x2aa   : > { %3889 = vmatprep.subr.bf16.mxu0 %v4335_v7 }
 0x2ad   : > { %3891 = vmatpush3.bf16.msra.mxu0 %v4335_v7 }
 0x2ae   : > { %3893 = vmatprep.subr.bf16.mxu0 %v4348_v16 }
 0x2b0   : > { %3356 = vmatmul.mubr.f32.vlgmr.msra.gmra.mrb[2].mxu0 %v1739_v37 }
 0x2b1   : > { %3895 = vmatpush3.bf16.msra.mxu0 %v4348_v16  ;;  %3390 = vmatprep.mubr.f32.mxu0 %v4712_v47  ;;  %v2475_v16 = vld [vmem:[%s241_s7 + $0x10] sm:$0xff] }
 0x2b2   : > { %3897 = vmatprep.subr.bf16.mxu0 %v4391_v39 }
 0x2b5   : > { %3899 = vmatpush3.bf16.msra.mxu0 %v4391_v39 }
 0x2b6   : > { %3901 = vmatprep.subr.bf16.mxu0 %v4393_v2 }
 0x2b9   : > { %3903 = vmatpush3.bf16.msra.mxu0 %v4393_v2 }
 0x2ba   : > { %3905 = vmatprep.subr.bf16.mxu0 %v4417_v13 }
 0x2bd   : > { %3907 = vmatpush3.bf16.msra.mxu0 %v4417_v13 }
 0x2be   : > { %3909 = vmatprep.subr.bf16.mxu0 %v4443_v29 }
 0x2c1   : > { %3911 = vmatpush3.bf16.msra.mxu0 %v4443_v29 }
 0x2c2   : > { %3913 = vmatprep.subr.bf16.mxu0 %v4455_v27 }
 0x2c5   : > { %3915 = vmatpush3.bf16.msra.mxu0 %v4455_v27 }
 0x2c6   : > { %3917 = vmatprep.subr.bf16.mxu0 %v4467_v11 }
 0x2c9   : > { %3919 = vmatpush3.bf16.msra.mxu0 %v4467_v11 }
 0x2ca   : > { %3921 = vmatprep.subr.bf16.mxu0 %v4475_v63 }
 0x2cd   : > { %3923 = vmatpush3.bf16.msra.mxu0 %v4475_v63 }
 0x2ce   : > { %3925 = vmatprep.subr.bf16.mxu0 %v4150_v15 }
 0x2d0   : > { %3391 = vmatmul.mubr.f32.vlgmr.msra.gmra.mrb[2].mxu0 %v4715_v51 }
 0x2d1   : > { %3927 = vmatpush3.bf16.msra.mxu0 %v4150_v15  ;;  %3425 = vmatprep.mubr.f32.mxu0 %v4712_v47  ;;  %v2330_v15 = vld [vmem:[%s241_s7] sm:$0xff] }
 0x2d2   : > { %3929 = vmatprep.subr.bf16.mxu0 %v4156_v18 }
 0x2d5   : > { %3931 = vmatpush3.bf16.msra.mxu0 %v4156_v18  ;;  %v2474_v18 = vld [vmem:[%s241_s7 + $0x8] sm:$0xff] }
 0x2d6   : > { %3933 = vmatprep.subr.bf16.mxu0 %v4183_v23 }
 0x2d9   : > { %3935 = vmatpush3.bf16.msra.mxu0 %v4183_v23 }
 0x2da   : > { %3937 = vmatprep.subr.bf16.mxu0 %v4207_v32 }
 0x2dd   : > { %3939 = vmatpush3.bf16.msra.mxu0 %v4207_v32  ;;  %v2336_v32 = vmul.f32 %v2330_v15, %v4709_v54 }
 0x2de   : > { %3941 = vmatprep.subr.bf16.mxu0 %v4232_v38 }
 0x2e1   : > { %3943 = vmatpush3.bf16.msra.mxu0 %v4232_v38 }
 0x2e2   : > { %3945 = vmatprep.subr.bf16.mxu0 %v4266_v48 }
 0x2e5   : > { %3947 = vmatpush3.bf16.msra.mxu0 %v4266_v48 }
 0x2e6   : > { %3949 = vmatprep.subr.bf16.mxu0 %v4304_v61 }
 0x2e9   : > { %3951 = vmatpush3.bf16.msra.mxu0 %v4304_v61  ;;  %v2335_v61 = vmul.f32 %v2330_v15, %v4707_v46 }
 0x2ea   : > { %3953 = vmatprep.subr.bf16.mxu0 %v4335_v7 }
 0x2ed   : > { %3955 = vmatpush3.bf16.msra.mxu0 %v4335_v7 }
 0x2f0   : > { %3426 = vmatmul.mubr.f32.vlgmr.msra.gmra.mrb[2].mxu0 %v4715_v51 }
 0x3c3   : > { %v3427_v23 = vpop.f32.mrb[2].mxu0 }
 0x3c4   : > { %v2338_v38 = vmul.f32 %v3427_v23, %v2474_v18  ;;  %v2320_v48 = vpop.f32.mrb[3].mxu0 }
 0x3c5   : > { %v2337_v25 = vmul.f32 %v2474_v18, %v2320_v48  ;;  %2351 = sbr.rel (!%p4100_p5) target bundleno = 980 (0x3d4), region = 112 }
 0x3c6   : > { %v2340_v33 = vadd.f32 %v2338_v38, %v2336_v32 }
 0x3c7   : > { %v2339_v39 = vadd.f32 %v2337_v25, %v2335_v61 }
 0x3c8   : > { %v2342_v7 = vadd.f32 %v2475_v16, %v2340_v33 }
 0x3c9   : > { %v2341_v2 = vadd.f32 %v2475_v16, %v2339_v39 }
 0x3ca   : > { %2344 = vst [vmem:[%s264_s8 + $0x8] sm:$0xff] %v2342_v7 }
 0x3cb   : > { %2343 = vst [vmem:[%s264_s8] sm:$0xff] %v2341_v2 }
 0x3d1   : > { %v2385_v13 = vld [vmem:[%s264_s8 + $0x8] sm:$0xff] }
 0x3d2   : > { %v2383_v3 = vld [vmem:[%s264_s8] sm:$0xff]  ;;  %2386 = vst [vmem:[%s2353_s10 + $0x10] sm:$0xff] %v2385_v13 }
 0x3d3   : > { %2384 = vst [vmem:[%s2353_s10] sm:$0xff] %v2383_v3 }
 0x3d4 PF: > { %p10_p10 = scmp.ge.s32.totalorder %s4083_s16, 4   ;;  %s4834_s12 = smov %s4037_s13 }
 0x3d5   : > { %s4835_s13 = smov %s4094_s19  ;;  %s4836_s14 = smov %s4083_s16 }
 0x3d6   :  { %12 = sbr.rel (!%p10_p10) target bundleno = 2 (0x2), region = 191 }

</bundles_post_ra>
